<compile_context>
chip_gen: v7x
topology: tpu7x:2x2x1
jax: 0.10.0
libtpu: 0.0.40
codegen_flags: <defaults>
</compile_context>

<pallas_src>
import math
import numpy as np
import jax
import jax.numpy as jnp
from jax.experimental import pallas as pl
from jax.experimental.pallas import tpu as pltpu

# ---- small, module-consistent shapes ---------------------------------------
B = 2
C_IN = 4
H = W = 16
KH = KW = 3
NUM_FEATURES = 32        # backbone.num_features
FC_DIM = 32              # fc_dim (512 in the original, shrunk)
NUM_CLASSES = 16
S = 30.0                 # ArcMarginProduct scale
MARGIN = 0.5             # ArcMarginProduct margin
BN_EPS = 1e-5

COS_M = math.cos(MARGIN)
SIN_M = math.sin(MARGIN)
TH = math.cos(math.pi - MARGIN)
MM = math.sin(math.pi - MARGIN) * MARGIN
# TODO(synk): `self.p = 3` (GeM power) is stored but never used in forward(); omitted.

# ---- lane/sublane-padded sizes (lane axis 128-wide everywhere) --------------
LANE = 128
K_RAW = KH * KW * C_IN           # 36  (im2col contraction dim)
K_PAD = LANE
NF_PAD = LANE                    # padded num_features
FD_PAD = LANE                    # padded fc_dim
NC_PAD = LANE                    # padded num_classes
P_ROWS = B * H * W               # 512 flattened patch rows
HW = H * W                       # 256 rows per batch element
ROWS_PAD = 8                     # pad batch rows to one full (8,128) vreg

# ---- advisory cost estimate (helps XLA overlap wrapper ops with the call) ---
FLOPS_EST = (2 * P_ROWS * K_PAD * NF_PAD          # conv matmul
             + 2 * P_ROWS * NF_PAD                # relu + pooling adds
             + 2 * ROWS_PAD * NF_PAD * FD_PAD     # fc matmul
             + 2 * ROWS_PAD * FD_PAD * NC_PAD)    # cosine matmul
TRANS_EST = 2 * FD_PAD + ROWS_PAD + ROWS_PAD * NC_PAD   # rsqrt(var), rsqrt(norm), sqrt(sine)
BYTES_EST = (P_ROWS * K_PAD * 2 + K_PAD * NF_PAD * 2 + NF_PAD * FD_PAD * 2
             + FD_PAD * 4 + FD_PAD * NC_PAD * 2 + ROWS_PAD * 4
             + ROWS_PAD * NC_PAD * 4 + ROWS_PAD * FD_PAD * 4)


# ---------------------------- Pallas kernel ---------------------------------
def shopee_kernel(patches_ref, conv_w_ref, fc_w_ref, fc_b_ref, arc_wt_ref,
                  label_ref, logits_ref, feat_ref):
    # ---- backbone: conv3x3 as ONE bf16 matmul (f32 acc) + ReLU --------------
    y = jnp.dot(patches_ref[...], conv_w_ref[...],
                preferred_element_type=jnp.float32)            # (P_ROWS, NF_PAD) f32
    y = jnp.maximum(y, 0.0)

    # ---- global average pool: f32 reduce over aligned 256-row slices --------
    # (static, 8-aligned sublane slices -> free views; no pool-matrix matmul)
    pooled = jnp.concatenate(
        [jnp.mean(y[b * HW:(b + 1) * HW, :], axis=0, keepdims=True)
         for b in range(B)], axis=0)                           # (B, NF_PAD) f32

    # ---- self.fc : Linear(num_features, fc_dim), bf16 operands, f32 acc -----
    pre = jnp.dot(pooled.astype(jnp.bfloat16), fc_w_ref[...],
                  preferred_element_type=jnp.float32) + fc_b_ref[...]   # (B, FD_PAD)

    # ---- self.bn : BatchNorm1d, training-mode batch stats, w=1, b=0 (f32) ---
    # NOTE: padded lanes (cols >= FC_DIM) are all-zero, so mu=var=0 there and
    # feat stays exactly 0 — keep that zero-padding invariant if beta/gamma
    # are ever added.
    mu = jnp.mean(pre, axis=0, keepdims=True)
    diff = pre - mu
    var = jnp.mean(diff * diff, axis=0, keepdims=True)          # biased variance
    feat = diff * jax.lax.rsqrt(var + BN_EPS)                   # (B, FD_PAD) f32

    # pad rows to a full (8,128) vreg: unmasked stores + clean ArcFace layout
    feat8 = jnp.concatenate(
        [feat, jnp.zeros((ROWS_PAD - B, FD_PAD), jnp.float32)], axis=0)
    feat_ref[...] = feat8                                       # unmasked (8,128) store

    # ---- loss_module : ArcMarginProduct -------------------------------------
    # Weight already normalized + transposed + bf16 in the wrapper.
    sumsq = jnp.sum(feat8 * feat8, axis=1, keepdims=True)
    feat_n = feat8 * jax.lax.rsqrt(jnp.maximum(sumsq, 1e-24))   # == F.normalize(feat)
    cosine = jnp.dot(feat_n.astype(jnp.bfloat16), arc_wt_ref[...],
                     preferred_element_type=jnp.float32)        # (8, NC_PAD) f32
    sine = jnp.sqrt(jnp.maximum(1.0 - cosine * cosine, 0.0))
    phi = cosine * COS_M - sine * SIN_M
    phi = jnp.where(cosine > TH, phi, cosine - MM)              # easy_margin=False

    # one_hot via a single broadcast compare against the (8,1) label column
    class_ids = jax.lax.broadcasted_iota(jnp.int32, (ROWS_PAD, NC_PAD), 1)
    one_hot = class_ids == label_ref[...]                       # (8,1) -> (8,128) compare
    logits_ref[...] = jnp.where(one_hot, phi, cosine) * S       # unmasked (8,128) store


# ---------------------------- JAX glue ---------------------------------------
def _pad2(a, rows, cols):
    r, c = a.shape
    return jnp.pad(a, ((0, rows - r), (0, cols - c)))


def im2col_flat(x_nhwc):
    """(B,H,W,C) -> (B*H*W, K_PAD) f32; patch order (ky, kx, c), pad=1, zero-padded K."""
    xp = jnp.pad(x_nhwc, ((0, 0), (1, 1), (1, 1), (0, 0)))
    cols = []
    for ky in range(KH):
        for kx in range(KW):
            cols.append(xp[:, ky:ky + H, kx:kx + W, :])
    p = jnp.stack(cols, axis=3)                                # (B, H, W, KH*KW, C)
    p = p.reshape(P_ROWS, K_RAW)
    return jnp.pad(p, ((0, 0), (0, K_PAD - K_RAW)))


def prepare_weights(conv_w, fc_w, fc_b, arc_w):
    """Input-independent operand prep — call ONCE, not per forward step.

    Pads every lane dim to 128, casts MXU operands to bf16, and hoists the
    ArcFace F.normalize(weight) + transpose off the per-call hot path.
    (If the weights were being trained, only the arc-weight normalize would
    need to move back into the per-call jit.)
    """
    conv_w2d = _pad2(conv_w.reshape(K_RAW, NUM_FEATURES),
                     K_PAD, NF_PAD).astype(jnp.bfloat16)
    fc_w_p = _pad2(fc_w, NF_PAD, FD_PAD).astype(jnp.bfloat16)
    fc_b_p = _pad2(fc_b, 1, FD_PAD).astype(jnp.float32)         # bias added post-acc in f32
    wnorm = jnp.sqrt(jnp.sum(arc_w * arc_w, axis=1, keepdims=True))
    arc_wn = arc_w / jnp.maximum(wnorm, 1e-12)                  # F.normalize(weight)
    arc_wt_p = _pad2(arc_wn.T, FD_PAD, NC_PAD).astype(jnp.bfloat16)  # pre-transposed
    return conv_w2d, fc_w_p, fc_b_p, arc_wt_p


def init_params(key):
    k1, k2, k3 = jax.random.split(key, 3)
    conv_w = 0.1 * jax.random.normal(k1, (KH, KW, C_IN, NUM_FEATURES), jnp.float32)
    # nn.init.xavier_normal_(fc.weight); fc.bias = 0
    std = math.sqrt(2.0 / (NUM_FEATURES + FC_DIM))
    fc_w = std * jax.random.normal(k2, (NUM_FEATURES, FC_DIM), jnp.float32)
    fc_b = jnp.zeros((1, FC_DIM), jnp.float32)
    arc_w = 0.1 * jax.random.normal(k3, (NUM_CLASSES, FC_DIM), jnp.float32)
    return conv_w, fc_w, fc_b, arc_w


@jax.jit
def shopee_forward(x_nchw, label, conv_w2d, fc_w_p, fc_b_p, arc_wt_p):
    """Per-call work: im2col of x, label padding, and the Pallas call."""
    x_nhwc = jnp.transpose(x_nchw, (0, 2, 3, 1))
    patches = im2col_flat(x_nhwc).astype(jnp.bfloat16)          # bf16 MXU operand
    label8 = jnp.full((ROWS_PAD, 1), -1, jnp.int32)
    label8 = label8.at[:B, 0].set(label.astype(jnp.int32))      # (8,1) label column

    vmem = pl.BlockSpec(memory_space=pltpu.MemorySpace.VMEM)
    cost = pl.CostEstimate(flops=FLOPS_EST, transcendentals=TRANS_EST,
                           bytes_accessed=BYTES_EST)

    # Single grid-less invocation: at these toy sizes everything fits VMEM.
    # TODO(synk): at real ShopeeNet sizes (fc_dim=512, ~11k classes) add a grid
    # over batch/class tiles: class tiles a multiple of 256 (v6e/v7x 2x256x256
    # MXU), double-buffered bf16 (512, TN) arc-weight tiles sized for v7x's
    # 64 MiB VMEM (TN <= ~4096), and the class-tile axis marked "parallel" in
    # dimension_semantics so v7x's second TensorCore is used.
    logits_p, feat_p = pl.pallas_call(
        shopee_kernel,
        out_shape=(jax.ShapeDtypeStruct((ROWS_PAD, NC_PAD), jnp.float32),
                   jax.ShapeDtypeStruct((ROWS_PAD, FD_PAD), jnp.float32)),
        in_specs=[vmem, vmem, vmem, vmem, vmem, vmem],
        out_specs=(vmem, vmem),
        cost_estimate=cost,
    )(patches, conv_w2d, fc_w_p, fc_b_p, arc_wt_p, label8)
    return logits_p[:B, :NUM_CLASSES], feat_p[:B, :FC_DIM]


def reference_forward(x_nchw, label, conv_w, fc_w, fc_b, arc_w):
    """Pure-JAX reference on the SAME numeric path (bf16 MXU operands, f32 acc)."""
    x_nhwc = jnp.transpose(x_nchw, (0, 2, 3, 1))
    xp = jnp.pad(x_nhwc, ((0, 0), (1, 1), (1, 1), (0, 0)))
    cols = [xp[:, ky:ky + H, kx:kx + W, :] for ky in range(KH) for kx in range(KW)]
    patches = jnp.stack(cols, axis=3).reshape(B, H * W, K_RAW)
    conv_w2d = conv_w.reshape(K_RAW, NUM_FEATURES)
    y = jnp.einsum('bpk,kf->bpf',
                   patches.astype(jnp.bfloat16), conv_w2d.astype(jnp.bfloat16),
                   preferred_element_type=jnp.float32)
    y = jnp.maximum(y, 0.0)
    pooled = jnp.mean(y, axis=1)                                # f32 pooling
    pre = jnp.dot(pooled.astype(jnp.bfloat16), fc_w.astype(jnp.bfloat16),
                  preferred_element_type=jnp.float32) + fc_b
    mu = jnp.mean(pre, axis=0, keepdims=True)
    diff = pre - mu
    var = jnp.mean(diff * diff, axis=0, keepdims=True)
    feat = diff * jax.lax.rsqrt(var + BN_EPS)
    sumsq = jnp.sum(feat * feat, axis=1, keepdims=True)
    feat_n = feat * jax.lax.rsqrt(jnp.maximum(sumsq, 1e-24))
    aw_n = arc_w / jnp.maximum(jnp.linalg.norm(arc_w, axis=1, keepdims=True), 1e-12)
    cosine = jnp.dot(feat_n.astype(jnp.bfloat16), aw_n.T.astype(jnp.bfloat16),
                     preferred_element_type=jnp.float32)
    sine = jnp.sqrt(jnp.maximum(1.0 - cosine * cosine, 0.0))
    phi = cosine * COS_M - sine * SIN_M
    phi = jnp.where(cosine > TH, phi, cosine - MM)
    one_hot = jax.nn.one_hot(label, NUM_CLASSES, dtype=jnp.bool_)
    logits = jnp.where(one_hot, phi, cosine) * S
    return logits, feat


if __name__ == "__main__":
    key = jax.random.PRNGKey(0)
    kx, kl, kp = jax.random.split(key, 3)
    x = jax.random.normal(kx, (B, C_IN, H, W), jnp.float32)        # NCHW input
    label = jax.random.randint(kl, (B,), 0, NUM_CLASSES, jnp.int32)
    conv_w, fc_w, fc_b, arc_w = init_params(kp)

    # One-time, input-independent weight prep (hoisted out of the per-call jit).
    conv_w2d, fc_w_p, fc_b_p, arc_wt_p = prepare_weights(conv_w, fc_w, fc_b, arc_w)
    jax.block_until_ready((conv_w2d, fc_w_p, fc_b_p, arc_wt_p))

    logits, feat = shopee_forward(x, label, conv_w2d, fc_w_p, fc_b_p, arc_wt_p)
    jax.block_until_ready((logits, feat))

    ref_logits, ref_feat = reference_forward(x, label, conv_w, fc_w, fc_b, arc_w)
    # logits go through a bf16 operand cast amplified by s=30, so allow a
    # slightly larger absolute slack there; feat is pure-f32 downstream of the
    # bf16 matmuls and matches tightly.
    np.testing.assert_allclose(np.asarray(logits), np.asarray(ref_logits),
                               rtol=2e-3, atol=1e-2)
    np.testing.assert_allclose(np.asarray(feat), np.asarray(ref_feat),
                               rtol=2e-3, atol=2e-3)
    print("KERNEL_OK")
</pallas_src>

<mosaic_0001>
module attributes {stable_mosaic.version = 11 : i64} {
  func.func @shopee_kernel(%arg0: memref<512x128xbf16, #tpu.memory_space<vmem>>, %arg1: memref<128x128xbf16, #tpu.memory_space<vmem>>, %arg2: memref<128x128xbf16, #tpu.memory_space<vmem>>, %arg3: memref<1x128xf32, #tpu.memory_space<vmem>>, %arg4: memref<128x128xbf16, #tpu.memory_space<vmem>>, %arg5: memref<8x1xi32, #tpu.memory_space<vmem>>, %arg6: memref<8x128xf32, #tpu.memory_space<vmem>>, %arg7: memref<8x128xf32, #tpu.memory_space<vmem>>) attributes {dimension_semantics = [], scalar_prefetch = 0 : i64, scratch_operands = 0 : i64, tpu.core_type = #tpu.core_type<tc>} {
    %c0 = arith.constant 0 : index
    %c0_0 = arith.constant 0 : index
    %0 = vector.load %arg0[%c0, %c0_0] : memref<512x128xbf16, #tpu.memory_space<vmem>>, vector<512x128xbf16>
    %c0_1 = arith.constant 0 : index
    %c0_2 = arith.constant 0 : index
    %1 = vector.load %arg1[%c0_1, %c0_2] : memref<128x128xbf16, #tpu.memory_space<vmem>>, vector<128x128xbf16>
    %cst = arith.constant dense<0.000000e+00> : vector<512x128xf32>
    %2 = tpu.matmul %0, %1, %cst {dimension_numbers = #tpu.dot_dimension_numbers<[1], [0], [0], [1], [0, 0, 1, 1], [], []>} : vector<512x128xbf16>, vector<128x128xbf16>, vector<512x128xf32> -> vector<512x128xf32>
    %cst_3 = arith.constant 0.000000e+00 : f32
    %3 = vector.broadcast %cst_3 : f32 to vector<512x128xf32>
    %4 = arith.maximumf %2, %3 : vector<512x128xf32>
    %5 = vector.extract_strided_slice %4 {offsets = [0, 0], sizes = [256, 128], strides = [1, 1]} : vector<512x128xf32> to vector<256x128xf32>
    %cst_4 = arith.constant dense<0.000000e+00> : vector<128xf32>
    %6 = vector.multi_reduction <add>, %5, %cst_4 [0] : vector<256x128xf32> to vector<128xf32>
    %7 = vector.shape_cast %6 : vector<128xf32> to vector<1x128xf32>
    %cst_5 = arith.constant 2.560000e+02 : f32
    %8 = vector.broadcast %cst_5 : f32 to vector<1x128xf32>
    %9 = arith.divf %7, %8 : vector<1x128xf32>
    %10 = vector.extract_strided_slice %4 {offsets = [256, 0], sizes = [256, 128], strides = [1, 1]} : vector<512x128xf32> to vector<256x128xf32>
    %cst_6 = arith.constant dense<0.000000e+00> : vector<128xf32>
    %11 = vector.multi_reduction <add>, %10, %cst_6 [0] : vector<256x128xf32> to vector<128xf32>
    %12 = vector.shape_cast %11 : vector<128xf32> to vector<1x128xf32>
    %cst_7 = arith.constant 2.560000e+02 : f32
    %13 = vector.broadcast %cst_7 : f32 to vector<1x128xf32>
    %14 = arith.divf %12, %13 : vector<1x128xf32>
    %15 = tpu.concatenate %9, %14 in 0 : vector<1x128xf32>, vector<1x128xf32> -> vector<2x128xf32>
    %16 = arith.truncf %15 : vector<2x128xf32> to vector<2x128xbf16>
    %c0_8 = arith.constant 0 : index
    %c0_9 = arith.constant 0 : index
    %17 = vector.load %arg2[%c0_8, %c0_9] : memref<128x128xbf16, #tpu.memory_space<vmem>>, vector<128x128xbf16>
    %cst_10 = arith.constant dense<0.000000e+00> : vector<2x128xf32>
    %18 = tpu.matmul %16, %17, %cst_10 {dimension_numbers = #tpu.dot_dimension_numbers<[1], [0], [0], [1], [0, 0, 1, 1], [], []>} : vector<2x128xbf16>, vector<128x128xbf16>, vector<2x128xf32> -> vector<2x128xf32>
    %c0_11 = arith.constant 0 : index
    %c0_12 = arith.constant 0 : index
    %19 = vector.load %arg3[%c0_11, %c0_12] : memref<1x128xf32, #tpu.memory_space<vmem>>, vector<1x128xf32>
    %20 = vector.broadcast %19 : vector<1x128xf32> to vector<2x128xf32>
    %21 = arith.addf %18, %20 : vector<2x128xf32>
    %cst_13 = arith.constant dense<0.000000e+00> : vector<128xf32>
    %22 = vector.multi_reduction <add>, %21, %cst_13 [0] : vector<2x128xf32> to vector<128xf32>
    %23 = vector.shape_cast %22 : vector<128xf32> to vector<1x128xf32>
    %cst_14 = arith.constant 2.000000e+00 : f32
    %24 = vector.broadcast %cst_14 : f32 to vector<1x128xf32>
    %25 = arith.divf %23, %24 : vector<1x128xf32>
    %26 = vector.broadcast %25 : vector<1x128xf32> to vector<2x128xf32>
    %27 = arith.subf %21, %26 : vector<2x128xf32>
    %28 = arith.mulf %27, %27 : vector<2x128xf32>
    %cst_15 = arith.constant dense<0.000000e+00> : vector<128xf32>
    %29 = vector.multi_reduction <add>, %28, %cst_15 [0] : vector<2x128xf32> to vector<128xf32>
    %30 = vector.shape_cast %29 : vector<128xf32> to vector<1x128xf32>
    %cst_16 = arith.constant 2.000000e+00 : f32
    %31 = vector.broadcast %cst_16 : f32 to vector<1x128xf32>
    %32 = arith.divf %30, %31 : vector<1x128xf32>
    %cst_17 = arith.constant 9.99999974E-6 : f32
    %33 = vector.broadcast %cst_17 : f32 to vector<1x128xf32>
    %34 = arith.addf %32, %33 : vector<1x128xf32>
    %35 = math.rsqrt %34 : vector<1x128xf32>
    %36 = vector.broadcast %35 : vector<1x128xf32> to vector<2x128xf32>
    %37 = arith.mulf %27, %36 : vector<2x128xf32>
    %cst_18 = arith.constant 0.000000e+00 : f32
    %38 = vector.broadcast %cst_18 : f32 to vector<6x128xf32>
    %39 = tpu.concatenate %37, %38 in 0 : vector<2x128xf32>, vector<6x128xf32> -> vector<8x128xf32>
    %c0_19 = arith.constant 0 : index
    %c0_20 = arith.constant 0 : index
    %40 = vector.load %arg7[%c0_19, %c0_20] : memref<8x128xf32, #tpu.memory_space<vmem>>, vector<8x128xf32>
    tpu.vector_store %arg7[%c0_19, %c0_20], %39 {strides = array<i32>} : memref<8x128xf32, #tpu.memory_space<vmem>>, vector<8x128xf32>,
    %41 = arith.mulf %39, %39 : vector<8x128xf32>
    %cst_21 = arith.constant dense<0.000000e+00> : vector<8xf32>
    %42 = vector.multi_reduction <add>, %41, %cst_21 [1] : vector<8x128xf32> to vector<8xf32>
    %43 = vector.shape_cast %42 : vector<8xf32> to vector<8x1xf32>
    %cst_22 = arith.constant 1.000000e-24 : f32
    %44 = vector.broadcast %cst_22 : f32 to vector<8x1xf32>
    %45 = arith.maximumf %43, %44 : vector<8x1xf32>
    %46 = math.rsqrt %45 : vector<8x1xf32>
    %47 = vector.broadcast %46 : vector<8x1xf32> to vector<8x128xf32>
    %48 = arith.mulf %39, %47 : vector<8x128xf32>
    %49 = arith.truncf %48 : vector<8x128xf32> to vector<8x128xbf16>
    %c0_23 = arith.constant 0 : index
    %c0_24 = arith.constant 0 : index
    %50 = vector.load %arg4[%c0_23, %c0_24] : memref<128x128xbf16, #tpu.memory_space<vmem>>, vector<128x128xbf16>
    %cst_25 = arith.constant dense<0.000000e+00> : vector<8x128xf32>
    %51 = tpu.matmul %49, %50, %cst_25 {dimension_numbers = #tpu.dot_dimension_numbers<[1], [0], [0], [1], [0, 0, 1, 1], [], []>} : vector<8x128xbf16>, vector<128x128xbf16>, vector<8x128xf32> -> vector<8x128xf32>
    %52 = arith.mulf %51, %51 : vector<8x128xf32>
    %cst_26 = arith.constant 1.000000e+00 : f32
    %53 = vector.broadcast %cst_26 : f32 to vector<8x128xf32>
    %54 = arith.subf %53, %52 : vector<8x128xf32>
    %cst_27 = arith.constant 0.000000e+00 : f32
    %55 = vector.broadcast %cst_27 : f32 to vector<8x128xf32>
    %56 = arith.maximumf %54, %55 : vector<8x128xf32>
    %57 = math.sqrt %56 : vector<8x128xf32>
    %cst_28 = arith.constant 0.87758255 : f32
    %58 = vector.broadcast %cst_28 : f32 to vector<8x128xf32>
    %59 = arith.mulf %51, %58 : vector<8x128xf32>
    %cst_29 = arith.constant 0.47942555 : f32
    %60 = vector.broadcast %cst_29 : f32 to vector<8x128xf32>
    %61 = arith.mulf %57, %60 : vector<8x128xf32>
    %62 = arith.subf %59, %61 : vector<8x128xf32>
    %cst_30 = arith.constant -0.87758255 : f32
    %63 = vector.broadcast %cst_30 : f32 to vector<8x128xf32>
    %64 = arith.cmpf ogt, %51, %63 : vector<8x128xf32>
    %cst_31 = arith.constant 0.239712775 : f32
    %65 = vector.broadcast %cst_31 : f32 to vector<8x128xf32>
    %66 = arith.subf %51, %65 : vector<8x128xf32>
    %67 = arith.select %64, %62, %66 : vector<8x128xi1>, vector<8x128xf32>
    %68 = tpu.iota {dimensions = array<i32: 1>} : vector<8x128xi32>
    %c0_32 = arith.constant 0 : index
    %c0_33 = arith.constant 0 : index
    %69 = vector.load %arg5[%c0_32, %c0_33] : memref<8x1xi32, #tpu.memory_space<vmem>>, vector<8x1xi32>
    %70 = vector.broadcast %69 : vector<8x1xi32> to vector<8x128xi32>
    %71 = arith.cmpi eq, %68, %70 : vector<8x128xi32>
    %72 = arith.select %71, %67, %51 : vector<8x128xi1>, vector<8x128xf32>
    %cst_34 = arith.constant 3.000000e+01 : f32
    %73 = vector.broadcast %cst_34 : f32 to vector<8x128xf32>
    %74 = arith.mulf %72, %73 : vector<8x128xf32>
    %c0_35 = arith.constant 0 : index
    %c0_36 = arith.constant 0 : index
    %75 = vector.load %arg6[%c0_35, %c0_36] : memref<8x128xf32, #tpu.memory_space<vmem>>, vector<8x128xf32>
    tpu.vector_store %arg6[%c0_35, %c0_36], %74 {strides = array<i32>} : memref<8x128xf32, #tpu.memory_space<vmem>>, vector<8x128xf32>,
    return
  }
}

</mosaic_0001>

<bundles_post_ra>
// kernel: shopee_forward.1
= control target key start
LH: loop header
LB: loop body
LE: loop exit
PB: predicated region body
PF: predicated region fallthrough
CT: control target
= control target key end

     0   :  { %v1378_v40 = vmov 0.0   ;;  %vm1379_vm0 = vmmov 0   ;;  %vm776_vm1 = vcmask 1040384   ;;  %vm890_vm2 = vcmask 1041408   ;;  %s1688_s1 = inlined_call_operand.vmem [shape: bf16[128,128], index: 1, kind: input, shape index: {}]   ;;  %s1689_s0 = inlined_call_operand.vmem [shape: bf16[512,128], index: 0, kind: input, shape index: {}]   ;;  %s1690_s2 = inlined_call_operand.vmem [shape: bf16[128,128], index: 2, kind: input, shape index: {}]   ;;  %s1691_s4 = inlined_call_operand.vmem [shape: bf16[128,128], index: 4, kind: input, shape index: {}]   ;;  %s1692_s3 = inlined_call_operand.vmem [shape: f32[1,128], index: 3, kind: input, shape index: {}]   ;;  %s1693_s7 = inlined_call_operand.vmem [shape: f32[8,128], index: 7, kind: output, shape index: {1}]   ;;  %s1694_s5 = inlined_call_operand.vmem [shape: s32[8,1], index: 5, kind: input, shape index: {}]   ;;  %s1695_s6 = inlined_call_operand.vmem [shape: f32[8,128], index: 6, kind: output, shape index: {0}]  }
   0x1   :  { %v1316_v0 = vld [vmem:[%s1688_s1] sm:$0xff]   ;;  %v1317_v1 = vld [vmem:[%s1688_s1 + $0x8] sm:$0xff]   ;;  %v1318_v2 = vld [vmem:[%s1688_s1 + $0x10] sm:$0xff]  }
   0x2   :  { %1176 = vmatprep.subr.bf16.mxu0 %v1316_v0  ;;  %1296 = vmatprep.subr.bf16.mxu1 %v1316_v0  ;;  %v1319_v3 = vld [vmem:[%s1688_s1 + $0x18] sm:$0xff]   ;;  %v1324_v4 = vld [vmem:[%s1689_s0] sm:$0xff]   ;;  %v1321_v6 = vld [vmem:[%s1688_s1 + $0x28] sm:$0xff]  }
   0x3   :  { %1177 = vmatpush3.bf16.msra.mxu0 %v1316_v0  ;;  %1304 = vmatpush3.bf16.msra.mxu1 %v1316_v0  ;;  %v1320_v5 = vld [vmem:[%s1688_s1 + $0x20] sm:$0xff]   ;;  %v1322_v7 = vld [vmem:[%s1688_s1 + $0x30] sm:$0xff]   ;;  %v1323_v8 = vld [vmem:[%s1688_s1 + $0x38] sm:$0xff]  }
   0x4   :  { %1178 = vmatprep.subr.bf16.mxu0 %v1317_v1  ;;  %1297 = vmatprep.subr.bf16.mxu1 %v1317_v1  ;;  %v1325_v9 = vld [vmem:[%s1689_s0 + $0x8] sm:$0xff]   ;;  %v1326_v10 = vld [vmem:[%s1689_s0 + $0x10] sm:$0xff]   ;;  %v1347_v12 = vld [vmem:[%s1689_s0 + $0xb8] sm:$0xff]  }
   0x5   :  { %1192 = vmatprep.mubr.bf16.mxu0 %v1324_v4  ;;  %v1346_v11 = vld [vmem:[%s1689_s0 + $0xb0] sm:$0xff]   ;;  %v1348_v13 = vld [vmem:[%s1689_s0 + $0xc0] sm:$0xff]   ;;  %v1327_v14 = vld [vmem:[%s1689_s0 + $0x18] sm:$0xff]  }
   0x6   :  { %1236 = vmatprep.mubr.bf16.mxu1 %v1346_v11  ;;  %v1328_v15 = vld [vmem:[%s1689_s0 + $0x20] sm:$0xff]   ;;  %v1349_v16 = vld [vmem:[%s1689_s0 + $0xc8] sm:$0xff]   ;;  %v1350_v17 = vld [vmem:[%s1689_s0 + $0xd0] sm:$0xff]  }
   0x7   :  { %1179 = vmatpush3.bf16.msra.mxu0 %v1317_v1  ;;  %1305 = vmatpush3.bf16.msra.mxu1 %v1317_v1  ;;  %v1329_v18 = vld [vmem:[%s1689_s0 + $0x28] sm:$0xff]   ;;  %v1351_v19 = vld [vmem:[%s1689_s0 + $0xd8] sm:$0xff]   ;;  %v1330_v20 = vld [vmem:[%s1689_s0 + $0x30] sm:$0xff]  }
   0x8   :  { %1180 = vmatprep.subr.bf16.mxu0 %v1318_v2  ;;  %1298 = vmatprep.subr.bf16.mxu1 %v1318_v2  ;;  %v1352_v21 = vld [vmem:[%s1689_s0 + $0xe0] sm:$0xff]   ;;  %v1331_v22 = vld [vmem:[%s1689_s0 + $0x38] sm:$0xff]   ;;  %v1353_v23 = vld [vmem:[%s1689_s0 + $0xe8] sm:$0xff]  }
   0x9   :  { %v1332_v24 = vld [vmem:[%s1689_s0 + $0x40] sm:$0xff]   ;;  %v1354_v25 = vld [vmem:[%s1689_s0 + $0xf0] sm:$0xff]   ;;  %v1333_v26 = vld [vmem:[%s1689_s0 + $0x48] sm:$0xff]  }
   0xa   :  { %v1355_v27 = vld [vmem:[%s1689_s0 + $0xf8] sm:$0xff]   ;;  %v1334_v28 = vld [vmem:[%s1689_s0 + $0x50] sm:$0xff]   ;;  %v1336_v30 = vld [vmem:[%s1689_s0 + $0x60] sm:$0xff]  }
   0xb   :  { %1181 = vmatpush3.bf16.msra.mxu0 %v1318_v2  ;;  %1306 = vmatpush3.bf16.msra.mxu1 %v1318_v2  ;;  %v1335_v29 = vld [vmem:[%s1689_s0 + $0x58] sm:$0xff]   ;;  %v1337_v31 = vld [vmem:[%s1689_s0 + $0x68] sm:$0xff]   ;;  %v1338_v32 = vld [vmem:[%s1689_s0 + $0x70] sm:$0xff]  }
   0xc   :  { %1182 = vmatprep.subr.bf16.mxu0 %v1319_v3  ;;  %1299 = vmatprep.subr.bf16.mxu1 %v1319_v3  ;;  %v1339_v33 = vld [vmem:[%s1689_s0 + $0x78] sm:$0xff]   ;;  %v1340_v34 = vld [vmem:[%s1689_s0 + $0x80] sm:$0xff]   ;;  %v1341_v35 = vld [vmem:[%s1689_s0 + $0x88] sm:$0xff]  }
   0xd   :  { %v1342_v36 = vld [vmem:[%s1689_s0 + $0x90] sm:$0xff]   ;;  %v1343_v37 = vld [vmem:[%s1689_s0 + $0x98] sm:$0xff]   ;;  %v1344_v38 = vld [vmem:[%s1689_s0 + $0xa0] sm:$0xff]  }
   0xe   :  { %v1345_v39 = vld [vmem:[%s1689_s0 + $0xa8] sm:$0xff]   ;;  %v1356_v41 = vld [vmem:[%s1690_s2] sm:$0xff]   ;;  %v1358_v43 = vld [vmem:[%s1690_s2 + $0x10] sm:$0xff]  }
   0xf   :  { %1183 = vmatpush3.bf16.msra.mxu0 %v1319_v3  ;;  %1307 = vmatpush3.bf16.msra.mxu1 %v1319_v3  ;;  %v1357_v42 = vld [vmem:[%s1690_s2 + $0x8] sm:$0xff]   ;;  %v1359_v46 = vld [vmem:[%s1690_s2 + $0x18] sm:$0xff]   ;;  %v1360_v55 = vld [vmem:[%s1690_s2 + $0x20] sm:$0xff]  }
  0x10   :  { %1184 = vmatprep.subr.bf16.mxu0 %v1320_v5  ;;  %1300 = vmatprep.subr.bf16.mxu1 %v1320_v5  ;;  %v1361_v62 = vld [vmem:[%s1690_s2 + $0x28] sm:$0xff]  }
  0x13   :  { %1185 = vmatpush3.bf16.msra.mxu0 %v1320_v5  ;;  %1308 = vmatpush3.bf16.msra.mxu1 %v1320_v5 }
  0x14   :  { %1186 = vmatprep.subr.bf16.mxu0 %v1321_v6  ;;  %1301 = vmatprep.subr.bf16.mxu1 %v1321_v6 }
  0x17   :  { %1187 = vmatpush3.bf16.msra.mxu0 %v1321_v6  ;;  %1309 = vmatpush3.bf16.msra.mxu1 %v1321_v6 }
  0x18   :  { %1188 = vmatprep.subr.bf16.mxu0 %v1322_v7  ;;  %1302 = vmatprep.subr.bf16.mxu1 %v1322_v7 }
  0x1b   :  { %1189 = vmatpush3.bf16.msra.mxu0 %v1322_v7  ;;  %1310 = vmatpush3.bf16.msra.mxu1 %v1322_v7 }
  0x1c   :  { %1190 = vmatprep.subr.bf16.mxu0 %v1323_v8  ;;  %1303 = vmatprep.subr.bf16.mxu1 %v1323_v8 }
  0x1f   :  { %1191 = vmatpush3.bf16.msra.mxu0 %v1323_v8  ;;  %1311 = vmatpush3.bf16.msra.mxu1 %v1323_v8 }
  0x20   :  { %1256 = vmatprep.subr.bf16.mxu1 %v1378_v40 }
  0x22   :  { %1193 = vmatmul.mubr.bf16.vlgmr.msra.gmra.mrb[0].mxu0 %v1325_v9  ;;  %1237 = vmatmul.mubr.bf16.vlgmr.msra.gmra.mrb[0].mxu1 %v1347_v12  ;;  %v1362_v9 = vld [vmem:[%s1690_s2 + $0x30] sm:$0xff]  }
  0x23   :  { %1196 = vmatprep.mubr.bf16.mxu0 %v1326_v10  ;;  %1240 = vmatprep.mubr.bf16.mxu1 %v1348_v13 }
  0x24   :  { %1257 = vmatpush3.bf16.msra.mxu1 %v1356_v41 }
  0x25   :  { %1258 = vmatprep.subr.bf16.mxu1 %v1378_v40 }
  0x28   :  { %1259 = vmatpush3.bf16.msra.mxu1 %v1357_v42 }
  0x29   :  { %1260 = vmatprep.subr.bf16.mxu1 %v1378_v40 }
  0x2a   :  { %1197 = vmatmul.mubr.bf16.gmra.mrb[4].mxu0 %v1327_v14  ;;  %1241 = vmatmul.mubr.bf16.gmra.mrb[4].mxu1 %v1349_v16  ;;  %v1363_v16 = vld [vmem:[%s1690_s2 + $0x38] sm:$0xff]  }
  0x2b   :  { %1200 = vmatprep.mubr.bf16.mxu0 %v1328_v15  ;;  %1244 = vmatprep.mubr.bf16.mxu1 %v1350_v17 }
  0x2c   :  { %1261 = vmatpush3.bf16.msra.mxu1 %v1358_v43 }
  0x2d   :  { %1262 = vmatprep.subr.bf16.mxu1 %v1378_v40 }
  0x30   :  { %1263 = vmatpush3.bf16.msra.mxu1 %v1359_v46 }
  0x31   :  { %1264 = vmatprep.subr.bf16.mxu1 %v1378_v40 }
  0x32   :  { %1201 = vmatmul.mubr.bf16.gmra.mrb[8].mxu0 %v1329_v18  ;;  %1245 = vmatmul.mubr.bf16.gmra.mrb[8].mxu1 %v1351_v19 }
  0x33   :  { %1204 = vmatprep.mubr.bf16.mxu0 %v1330_v20  ;;  %1248 = vmatprep.mubr.bf16.mxu1 %v1352_v21 }
  0x34   :  { %1265 = vmatpush3.bf16.msra.mxu1 %v1360_v55 }
  0x35   :  { %1266 = vmatprep.subr.bf16.mxu1 %v1378_v40 }
  0x38   :  { %1267 = vmatpush3.bf16.msra.mxu1 %v1361_v62 }
  0x39   :  { %1268 = vmatprep.subr.bf16.mxu1 %v1378_v40 }
  0x3a   :  { %1205 = vmatmul.mubr.bf16.gmra.mrb[12].mxu0 %v1331_v22  ;;  %1249 = vmatmul.mubr.bf16.gmra.mrb[12].mxu1 %v1353_v23 }
  0x3b   :  { %1208 = vmatprep.mubr.bf16.mxu0 %v1332_v24  ;;  %1252 = vmatprep.mubr.bf16.mxu1 %v1354_v25 }
  0x3c   :  { %1269 = vmatpush3.bf16.msra.mxu1 %v1362_v9 }
  0x3d   :  { %1270 = vmatprep.subr.bf16.mxu1 %v1378_v40 }
  0x40   :  { %1271 = vmatpush3.bf16.msra.mxu1 %v1363_v16 }
  0x41   :  { %1276 = vmatprep.subr.bf16.mxu1 %v1378_v40 }
  0x42   :  { %1209 = vmatmul.mubr.bf16.gmra.mrb[16].mxu0 %v1333_v26  ;;  %1253 = vmatmul.mubr.bf16.gmra.mrb[16].mxu1 %v1355_v27 }
  0x43   :  { %1212 = vmatprep.mubr.bf16.mxu0 %v1334_v28  ;;  %1272 = vmatprep.mubr.msk.bf16.mxu1 %vm1379_vm0, %v1378_v40 }
  0x4a   :  { %1213 = vmatmul.mubr.bf16.gmra.mrb[20].mxu0 %v1335_v29 }
  0x4b   :  { %1216 = vmatprep.mubr.bf16.mxu0 %v1336_v30 }
  0x52   :  { %1217 = vmatmul.mubr.bf16.gmra.mrb[24].mxu0 %v1337_v31 }
  0x53   :  { %1220 = vmatprep.mubr.bf16.mxu0 %v1338_v32 }
  0x5a   :  { %1221 = vmatmul.mubr.bf16.gmra.mrb[28].mxu0 %v1339_v33 }
  0x5b   :  { %1224 = vmatprep.mubr.bf16.mxu0 %v1340_v34 }
  0x62   :  { %1225 = vmatmul.mubr.bf16.gmra.mrb[32].mxu0 %v1341_v35 }
  0x63   :  { %1228 = vmatprep.mubr.bf16.mxu0 %v1342_v36 }
  0x6a   :  { %1229 = vmatmul.mubr.bf16.gmra.mrb[36].mxu0 %v1343_v37 }
  0x6b   :  { %1232 = vmatprep.mubr.bf16.mxu0 %v1344_v38 }
  0x72   :  { %1233 = vmatmul.mubr.bf16.gmra.mrb[40].mxu0 %v1345_v39 }
  0xf5   :  { %v1194_v44 = vpop.f32.mrb[0].mxu0  ;;  %v1554_v45 = vpop.f32.mrb[0].mxu1 }
  0xf6   :  { %v380_v47 = vpop.f32.mrb[1].mxu0  ;;  %v1559_v48 = vpop.f32.mrb[1].mxu1  ;;  %v637_v56 = vmax.f32 %v1194_v44, 0.0 }
  0xf7   :  { %v1195_v49 = vpop.f32.mrb[2].mxu0  ;;  %v1561_v50 = vpop.f32.mrb[2].mxu1  ;;  %v635_v53 = vmax.f32 %v380_v47, 0.0 }
  0xf8   :  { %v383_v51 = vpop.f32.mrb[3].mxu0  ;;  %v1563_v52 = vpop.f32.mrb[3].mxu1  ;;  %v638_v58 = vmax.f32 %v1195_v49, 0.0 }
  0xf9   :  { %v636_v54 = vmax.f32 %v383_v51, 0.0 }
  0xfb   :  { %v699_v57 = vadd.f32 %v636_v54, %v635_v53 }
  0xfd   :  { %v700_v59 = vadd.f32 %v699_v57, %v637_v56  ;;  %v1198_v60 = vpop.f32.mrb[4].mxu0  ;;  %v1570_v61 = vpop.f32.mrb[4].mxu1 }
  0xfe   :  { %v396_v63 = vpop.f32.mrb[5].mxu0  ;;  %v1575_v0 = vpop.f32.mrb[5].mxu1  ;;  %v641_v10 = vmax.f32 %v1198_v60, 0.0 }
  0xff   :  { %v639_v1 = vmax.f32 %v396_v63, 0.0  ;;  %v701_v2 = vadd.f32 %v700_v59, %v638_v58  ;;  %v1199_v3 = vpop.f32.mrb[6].mxu0  ;;  %v1577_v4 = vpop.f32.mrb[6].mxu1 }
 0x100   :  { %v399_v5 = vpop.f32.mrb[7].mxu0  ;;  %v1579_v6 = vpop.f32.mrb[7].mxu1  ;;  %v642_v12 = vmax.f32 %v1199_v3, 0.0 }
 0x101   :  { %v702_v7 = vadd.f32 %v701_v2, %v639_v1  ;;  %v640_v8 = vmax.f32 %v399_v5, 0.0 }
 0x103   :  { %v703_v11 = vadd.f32 %v702_v7, %v640_v8 }
 0x105   :  { %v704_v13 = vadd.f32 %v703_v11, %v641_v10  ;;  %v1202_v14 = vpop.f32.mrb[8].mxu0  ;;  %v1586_v15 = vpop.f32.mrb[8].mxu1 }
 0x106   :  { %v412_v17 = vpop.f32.mrb[9].mxu0  ;;  %v1591_v18 = vpop.f32.mrb[9].mxu1  ;;  %v645_v27 = vmax.f32 %v1202_v14, 0.0 }
 0x107   :  { %v643_v19 = vmax.f32 %v412_v17, 0.0  ;;  %v705_v20 = vadd.f32 %v704_v13, %v642_v12  ;;  %v1203_v21 = vpop.f32.mrb[10].mxu0  ;;  %v1595_v22 = vpop.f32.mrb[10].mxu1 }
 0x108   :  { %v415_v23 = vpop.f32.mrb[11].mxu0  ;;  %v1597_v24 = vpop.f32.mrb[11].mxu1  ;;  %v646_v29 = vmax.f32 %v1203_v21, 0.0 }
 0x109   :  { %v706_v25 = vadd.f32 %v705_v20, %v643_v19  ;;  %v644_v26 = vmax.f32 %v415_v23, 0.0 }
 0x10b   :  { %v707_v28 = vadd.f32 %v706_v25, %v644_v26 }
 0x10d   :  { %v708_v30 = vadd.f32 %v707_v28, %v645_v27  ;;  %v1206_v31 = vpop.f32.mrb[12].mxu0  ;;  %v1600_v32 = vpop.f32.mrb[12].mxu1 }
 0x10e   :  { %v428_v33 = vpop.f32.mrb[13].mxu0  ;;  %v1602_v34 = vpop.f32.mrb[13].mxu1  ;;  %v649_v44 = vmax.f32 %v1206_v31, 0.0 }
 0x10f   :  { %v647_v35 = vmax.f32 %v428_v33, 0.0  ;;  %v709_v36 = vadd.f32 %v708_v30, %v646_v29  ;;  %v1207_v37 = vpop.f32.mrb[14].mxu0  ;;  %v1604_v38 = vpop.f32.mrb[14].mxu1 }
 0x110   :  { %v431_v39 = vpop.f32.mrb[15].mxu0  ;;  %v1606_v41 = vpop.f32.mrb[15].mxu1  ;;  %v650_v47 = vmax.f32 %v1207_v37, 0.0 }
 0x111   :  { %v710_v42 = vadd.f32 %v709_v36, %v647_v35  ;;  %v648_v43 = vmax.f32 %v431_v39, 0.0 }
 0x113   :  { %v711_v46 = vadd.f32 %v710_v42, %v648_v43 }
 0x115   :  { %v712_v49 = vadd.f32 %v711_v46, %v649_v44  ;;  %v1210_v51 = vpop.f32.mrb[16].mxu0  ;;  %v1608_v53 = vpop.f32.mrb[16].mxu1 }
 0x116   :  { %v444_v54 = vpop.f32.mrb[17].mxu0  ;;  %v1610_v55 = vpop.f32.mrb[17].mxu1  ;;  %v653_v2 = vmax.f32 %v1210_v51, 0.0 }
 0x117   :  { %v651_v56 = vmax.f32 %v444_v54, 0.0  ;;  %v713_v57 = vadd.f32 %v712_v49, %v650_v47  ;;  %v1211_v58 = vpop.f32.mrb[18].mxu0  ;;  %v1612_v59 = vpop.f32.mrb[18].mxu1 }
 0x118   :  { %v447_v60 = vpop.f32.mrb[19].mxu0  ;;  %v1614_v62 = vpop.f32.mrb[19].mxu1  ;;  %v654_v5 = vmax.f32 %v1211_v58, 0.0 }
 0x119   :  { %v714_v63 = vadd.f32 %v713_v57, %v651_v56  ;;  %v652_v1 = vmax.f32 %v447_v60, 0.0 }
 0x11b   :  { %v715_v3 = vadd.f32 %v714_v63, %v652_v1 }
 0x11d   :  { %v716_v7 = vadd.f32 %v715_v3, %v653_v2  ;;  %v1214_v8 = vpop.f32.mrb[20].mxu0 }
 0x11e   :  { %v460_v9 = vpop.f32.mrb[21].mxu0  ;;  %v657_v17 = vmax.f32 %v1214_v8, 0.0 }
 0x11f   :  { %v655_v10 = vmax.f32 %v460_v9, 0.0  ;;  %v717_v11 = vadd.f32 %v716_v7, %v654_v5  ;;  %v1215_v12 = vpop.f32.mrb[22].mxu0 }
 0x120   :  { %v463_v13 = vpop.f32.mrb[23].mxu0  ;;  %v658_v20 = vmax.f32 %v1215_v12, 0.0 }
 0x121   :  { %v718_v14 = vadd.f32 %v717_v11, %v655_v10  ;;  %v656_v16 = vmax.f32 %v463_v13, 0.0 }
 0x123   :  { %v719_v19 = vadd.f32 %v718_v14, %v656_v16 }
 0x125   :  { %v720_v21 = vadd.f32 %v719_v19, %v657_v17  ;;  %v1218_v23 = vpop.f32.mrb[24].mxu0 }
 0x126   :  { %v476_v25 = vpop.f32.mrb[25].mxu0  ;;  %v661_v33 = vmax.f32 %v1218_v23, 0.0 }
 0x127   :  { %v659_v26 = vmax.f32 %v476_v25, 0.0  ;;  %v721_v27 = vadd.f32 %v720_v21, %v658_v20  ;;  %v1219_v28 = vpop.f32.mrb[26].mxu0 }
 0x128   :  { %v479_v29 = vpop.f32.mrb[27].mxu0  ;;  %v662_v36 = vmax.f32 %v1219_v28, 0.0 }
 0x129   :  { %v722_v30 = vadd.f32 %v721_v27, %v659_v26  ;;  %v660_v31 = vmax.f32 %v479_v29, 0.0 }
 0x12b   :  { %v723_v35 = vadd.f32 %v722_v30, %v660_v31 }
 0x12d   :  { %v724_v37 = vadd.f32 %v723_v35, %v661_v33  ;;  %v1222_v39 = vpop.f32.mrb[28].mxu0 }
 0x12e   :  { %v492_v42 = vpop.f32.mrb[29].mxu0  ;;  %v665_v54 = vmax.f32 %v1222_v39, 0.0 }
 0x12f   :  { %v663_v43 = vmax.f32 %v492_v42, 0.0  ;;  %v725_v44 = vadd.f32 %v724_v37, %v662_v36  ;;  %v1223_v46 = vpop.f32.mrb[30].mxu0 }
 0x130   :  { %v495_v47 = vpop.f32.mrb[31].mxu0  ;;  %v666_v57 = vmax.f32 %v1223_v46, 0.0  ;;  %v679_v46 = vmax.f32 %v1559_v48, 0.0  ;;  %v686_v48 = vmax.f32 %v1577_v4, 0.0  ;;  %v693_v4 = vmax.f32 %v1600_v32, 0.0 }
 0x131   :  { %v726_v49 = vadd.f32 %v725_v44, %v663_v43  ;;  %v664_v51 = vmax.f32 %v495_v47, 0.0  ;;  %v698_v32 = vmax.f32 %v1612_v59, 0.0  ;;  %v1364_v59 = vld [vmem:[%s1691_s4] sm:$0xff]  }
 0x133   :  { %v727_v56 = vadd.f32 %v726_v49, %v664_v51  ;;  %v680_v51 = vmax.f32 %v1563_v52, 0.0  ;;  %v687_v52 = vmax.f32 %v1591_v18, 0.0 }
 0x135   :  { %v728_v58 = vadd.f32 %v727_v56, %v665_v54  ;;  %v1226_v60 = vpop.f32.mrb[32].mxu0  ;;  %v681_v54 = vmax.f32 %v1554_v45, 0.0 }
 0x136   :  { %v508_v63 = vpop.f32.mrb[33].mxu0  ;;  %v669_v8 = vmax.f32 %v1226_v60, 0.0  ;;  %v683_v60 = vmax.f32 %v1575_v0, 0.0  ;;  %v690_v0 = vmax.f32 %v1595_v22, 0.0 }
 0x137   :  { %v1616_v1 = vadd.f32 %v728_v58, %v666_v57  ;;  %v1227_v2 = vpop.f32.mrb[34].mxu0  ;;  %v667_v5 = vmax.f32 %v508_v63, 0.0  ;;  %v682_v57 = vmax.f32 %v1561_v50, 0.0  ;;  %v689_v50 = vmax.f32 %v1586_v15, 0.0 }
 0x138   :  { %v511_v3 = vpop.f32.mrb[35].mxu0  ;;  %v670_v10 = vmax.f32 %v1227_v2, 0.0  ;;  %v695_v15 = vmax.f32 %v1610_v55, 0.0 }
 0x139   :  { %v668_v7 = vmax.f32 %v511_v3, 0.0  ;;  %v684_v3 = vmax.f32 %v1579_v6, 0.0  ;;  %v691_v6 = vmax.f32 %v1602_v34, 0.0  ;;  %v730_v18 = vrot.slane %v1616_v1, 4 }
 0x13a   :  { %v696_v34 = vmax.f32 %v1614_v62, 0.0 }
 0x13b   :  { %v738_v9 = vadd.f32 %v668_v7, %v667_v5  ;;  %v685_v5 = vmax.f32 %v1570_v61, 0.0  ;;  %v731_v22 = vadd.f32 %v730_v18, %v1616_v1  ;;  %v1371_v18 = vld [vmem:[%s1691_s4 + $0x38] sm:$0xff]  }
 0x13d   :  { %v739_v11 = vadd.f32 %v738_v9, %v669_v8  ;;  %v1230_v12 = vpop.f32.mrb[36].mxu0 }
 0x13e   :  { %v524_v13 = vpop.f32.mrb[37].mxu0  ;;  %v673_v23 = vmax.f32 %v1230_v12, 0.0 }
 0x13f   :  { %v671_v14 = vmax.f32 %v524_v13, 0.0  ;;  %v740_v16 = vadd.f32 %v739_v11, %v670_v10  ;;  %v1231_v17 = vpop.f32.mrb[38].mxu0  ;;  %v688_v10 = vmax.f32 %v1597_v24, 0.0 }
 0x140   :  { %v527_v19 = vpop.f32.mrb[39].mxu0  ;;  %v674_v26 = vmax.f32 %v1231_v17, 0.0  ;;  %v694_v17 = vmax.f32 %v1604_v38, 0.0 }
 0x141   :  { %v741_v20 = vadd.f32 %v740_v16, %v671_v14  ;;  %v672_v21 = vmax.f32 %v527_v19, 0.0  ;;  %v692_v14 = vmax.f32 %v1606_v41, 0.0  ;;  %v732_v41 = vrot.slane %v731_v22, 2 }
 0x143   :  { %v742_v25 = vadd.f32 %v741_v20, %v672_v21  ;;  %v697_v21 = vmax.f32 %v1608_v53, 0.0 }
 0x145   :  { %v743_v27 = vadd.f32 %v742_v25, %v673_v23  ;;  %v1234_v28 = vpop.f32.mrb[40].mxu0 }
 0x146   :  { %v540_v29 = vpop.f32.mrb[41].mxu0  ;;  %v677_v39 = vmax.f32 %v1234_v28, 0.0 }
 0x147   :  { %v675_v30 = vmax.f32 %v540_v29, 0.0  ;;  %v744_v31 = vadd.f32 %v743_v27, %v674_v26  ;;  %v1235_v33 = vpop.f32.mrb[42].mxu0  ;;  %v733_v27 = vadd.f32 %v732_v41, %v731_v22 }
 0x148   :  { %v543_v35 = vpop.f32.mrb[43].mxu0  ;;  %v678_v43 = vmax.f32 %v1235_v33, 0.0 }
 0x149   :  { %v745_v36 = vadd.f32 %v744_v31, %v675_v30  ;;  %v676_v37 = vmax.f32 %v543_v35, 0.0  ;;  %v734_v29 = vrot.slane %v733_v27, 1 }
 0x14b   :  { %v746_v42 = vadd.f32 %v745_v36, %v676_v37  ;;  %v735_v31 = vadd.f32 %v734_v29, %v733_v27  ;;  %v1365_v37 = vld [vmem:[%s1691_s4 + $0x8] sm:$0xff]   ;;  %v1042_v27 = vlaneseq }
 0x14d   :  { %v747_v44 = vadd.f32 %v746_v42, %v677_v39  ;;  %v737_v35 = vmul.f32 0.00390625, %v735_v31  ;;  %v1366_v39 = vld [vmem:[%s1691_s4 + $0x10] sm:$0xff]   ;;  %v1367_v42 = vld [vmem:[%s1691_s4 + $0x18] sm:$0xff]  }
 0x14f   :  { %v748_v47 = vadd.f32 %v747_v44, %v678_v43  ;;  %v1100_v43 = vld [vmem:[%s1692_s3] ss:$0 sm:$0xff] }
 0x151   :  { %v749_v49 = vadd.f32 %v748_v47, %v679_v46 }
 0x153   :  { %v750_v56 = vadd.f32 %v749_v49, %v680_v51 }
 0x155   :  { %v751_v58 = vadd.f32 %v750_v56, %v681_v54 }
 0x157   :  { %v752_v63 = vadd.f32 %v751_v58, %v682_v57 }
 0x159   :  { %v753_v2 = vadd.f32 %v752_v63, %v683_v60 }
 0x15b   :  { %v754_v7 = vadd.f32 %v753_v2, %v684_v3 }
 0x15d   :  { %v755_v8 = vadd.f32 %v754_v7, %v685_v5 }
 0x15f   :  { %v756_v9 = vadd.f32 %v755_v8, %v686_v48 }
 0x161   :  { %v757_v45 = vadd.f32 %v756_v9, %v687_v52 }
 0x163   :  { %v758_v11 = vadd.f32 %v757_v45, %v688_v10 }
 0x165   :  { %v759_v12 = vadd.f32 %v758_v11, %v689_v50 }
 0x167   :  { %v760_v13 = vadd.f32 %v759_v12, %v690_v0 }
 0x169   :  { %v761_v61 = vadd.f32 %v760_v13, %v691_v6 }
 0x16b   :  { %v762_v16 = vadd.f32 %v761_v61, %v692_v14  ;;  %v1368_v14 = vld [vmem:[%s1691_s4 + $0x20] sm:$0xff]  }
 0x16d   :  { %v763_v24 = vadd.f32 %v762_v16, %v693_v4  ;;  %v1369_v4 = vld [vmem:[%s1691_s4 + $0x28] sm:$0xff]   ;;  %v1370_v16 = vld [vmem:[%s1691_s4 + $0x30] sm:$0xff]  }
 0x16f   :  { %v764_v19 = vadd.f32 %v763_v24, %v694_v17  ;;  %v1380_v17 = vmov 0   ;;  %v1044_v24 = vld [vmem:[%s1694_s5] sm:$0xff] }
 0x170   :  { %1315 = vset.pattern.permute.xlu0 %v1380_v17 }
 0x171   :  { %v765_v20 = vadd.f32 %v764_v19, %v695_v15 }
 0x173   :  { %v766_v23 = vadd.f32 %v765_v20, %v696_v34 }
 0x175   :  { %v767_v25 = vadd.f32 %v766_v23, %v697_v21 }
 0x177   :  { %v768_v26 = vadd.f32 %v767_v25, %v698_v32 }
 0x179   :  { %v769_v28 = vrot.slane %v768_v26, 4 }
 0x17b   :  { %v770_v38 = vadd.f32 %v769_v28, %v768_v26 }
 0x17d   :  { %v771_v30 = vrot.slane %v770_v38, 2 }
 0x17f   :  { %v772_v55 = vadd.f32 %v771_v30, %v770_v38  ;;  %v1043_v30 = vand.u32 127, %v1042_v27 }
 0x181   :  { %v773_v33 = vrot.slane %v772_v55, 1 }
 0x183   :  { %v774_v1 = vadd.f32 %v773_v33, %v772_v55 }
 0x185   :  { %v775_v62 = vmul.f32 0.00390625, %v774_v1 }
 0x187   :  { %v777_v36 = vsel %vm776_vm1, %v737_v35, %v775_v62 }
 0x188   :  { %v778_v53 = vpack.c.bf16 %v777_v36, %v777_v36 }
 0x18a   :  { %1273 = vmatmul.mubr.bf16.vlgmr.msra.gmra.mrb[20].mxu1 %v778_v53 }
 0x18b   :  { %1292 = vmatprep.mubr.msk.bf16.mxu1 %vm1379_vm0, %v1378_v40  ;;  %1277 = vmatpush3.bf16.msra.mxu1 %v1364_v59 }
 0x18c   :  { %1278 = vmatprep.subr.bf16.mxu1 %v1378_v40 }
 0x18f   :  { %1279 = vmatpush3.bf16.msra.mxu1 %v1365_v37 }
 0x190   :  { %1280 = vmatprep.subr.bf16.mxu1 %v1378_v40 }
 0x193   :  { %1281 = vmatpush3.bf16.msra.mxu1 %v1366_v39 }
 0x194   :  { %1282 = vmatprep.subr.bf16.mxu1 %v1378_v40 }
 0x197   :  { %1283 = vmatpush3.bf16.msra.mxu1 %v1367_v42 }
 0x198   :  { %1284 = vmatprep.subr.bf16.mxu1 %v1378_v40 }
 0x19b   :  { %1285 = vmatpush3.bf16.msra.mxu1 %v1368_v14 }
 0x19c   :  { %1286 = vmatprep.subr.bf16.mxu1 %v1378_v40 }
 0x19f   :  { %1287 = vmatpush3.bf16.msra.mxu1 %v1369_v4 }
 0x1a0   :  { %1288 = vmatprep.subr.bf16.mxu1 %v1378_v40 }
 0x1a3   :  { %1289 = vmatpush3.bf16.msra.mxu1 %v1370_v16 }
 0x1a4   :  { %1290 = vmatprep.subr.bf16.mxu1 %v1378_v40 }
 0x1a7   :  { %1291 = vmatpush3.bf16.msra.mxu1 %v1371_v18 }
 0x25d   :  { %v884_v44 = vpop.f32.mrb[20].mxu1 }
 0x25e   :  { %v885_v46 = vadd.f32 %v1100_v43, %v884_v44  ;;  %v1274_v47 = vpop.f32.mrb[21].mxu1 }
 0x25f   :  { %v887_v49 = vpop.f32.mrb[22].mxu1 }
 0x260   :  { %v891_v51 = vsel %vm890_vm2, %v885_v46, 0.0  ;;  %v1275_v54 = vpop.f32.mrb[23].mxu1 }
 0x261   :  { %v892_v56 = vrot.slane %v891_v51, 4 }
 0x263   :  { %v893_v57 = vadd.f32 %v892_v56, %v891_v51 }
 0x265   :  { %v894_v58 = vrot.slane %v893_v57, 2 }
 0x267   :  { %v895_v60 = vadd.f32 %v894_v58, %v893_v57 }
 0x269   :  { %v896_v63 = vrot.slane %v895_v60, 1 }
 0x26b   :  { %v897_v2 = vadd.f32 %v896_v63, %v895_v60 }
 0x26d   :  { %v899_v3 = vmul.f32 0.5, %v897_v2 }
 0x26f   :  { %v900_v5 = vsub.f32 %v885_v46, %v899_v3 }
 0x271   :  { %v901_v7 = vmul.f32 %v900_v5, %v900_v5 }
 0x273   :  { %v902_v48 = vsel %vm890_vm2, %v901_v7, 0.0 }
 0x274   :  { %v903_v8 = vrot.slane %v902_v48, 4 }
 0x276   :  { %v904_v52 = vadd.f32 %v903_v8, %v902_v48 }
 0x278   :  { %v905_v9 = vrot.slane %v904_v52, 2 }
 0x27a   :  { %v906_v45 = vadd.f32 %v905_v9, %v904_v52 }
 0x27c   :  { %v907_v10 = vrot.slane %v906_v45, 1 }
 0x27e   :  { %v908_v50 = vadd.f32 %v907_v10, %v906_v45 }
 0x280   :  { %v909_v11 = vmul.f32 0.5, %v908_v50 }
 0x282   :  { %v910_v0 = vadd.f32 1e-05, %v909_v11 }
 0x284   :  { %1372 = vrsqrt.f32 %v910_v0 }
 0x28e   :  { %v1373_v12 = vpop.eup %1372 }
 0x28f   :  { %v912_v6 = vmul.f32 %v1373_v12, %v900_v5 }
 0x291   :  { %v913_v13 = vsel %vm890_vm2, %v912_v6, 0.0 }
 0x292   :  { %v915_v61 = vmul.f32 %v913_v13, %v913_v13  ;;  %914 = vst [vmem:[%s1693_s7] sm:$0xff] %v913_v13 }
 0x294   :  { %916 = vadd.xlane.f32.xlu0 %v915_v61 }
 0x2aa   :  { %1046 = vperm.xlu0 %1315, %v1044_v24  }
 0x321   :  { %v917_v15 = vpop.xlane.xlu0 %916 }
 0x322   :  { %v918_v19 = vmax.f32 %v917_v15, 1e-24 }
 0x324   :  { %1374 = vrsqrt.f32 %v918_v19 }
 0x329   :  { %v1047_v31 = vpop.permute.xlu0 %1046 }
 0x32a   :  { %vm1048_vm5 = vcmp.eq.s32.totalorder %v1043_v30, %v1047_v31 }
 0x32e   :  { %v1375_v22 = vpop.eup %1374 }
 0x32f   :  { %v920_v20 = vmul.f32 %v1375_v22, %v913_v13 }
 0x331   :  { %v921_v34 = vpack.c.bf16 %v920_v20, %v920_v20 }
 0x333   :  { %1293 = vmatmul.mubr.bf16.vlgmr.msra.gmra.mrb[24].mxu1 %v921_v34 }
 0x406   :  { %v1020_v21 = vpop.f32.mrb[24].mxu1 }
 0x407   :  { %v1026_v23 = vmul.f32 %v1020_v21, %v1020_v21  ;;  %v1294_v41 = vpop.f32.mrb[25].mxu1  ;;  %v1036_v1 = vmul.f32 0.87758255, %v1020_v21  ;;  %v1117_v62 = vadd.f32 -0.23971277, %v1020_v21 }
 0x408   :  { %v1023_v32 = vpop.f32.mrb[26].mxu1  ;;  %vm1039_vm6 = vcmp.gt.f32.partialorder %v1020_v21, -0.87758255 }
 0x409   :  { %v1027_v40 = vsub.f32 1.0, %v1026_v23  ;;  %v1295_v25 = vpop.f32.mrb[27].mxu1 }
 0x40b   :  { %v1028_v26 = vmax.f32 %v1027_v40, 0.0 }
 0x40d   :  { %1376 = vrsqrt.f32 %v1028_v26  ;;  %vm1031_vm3 = vcmp.eq.f32.partialorder %v1028_v26, inf  ;;  %v1034_v29 = vand.u32 2147483648, %v1028_v26  ;;  %vm1033_vm4 = vcmp.eq.f32.partialorder %v1028_v26, 0.0 }
 0x417   :  { %v1377_v28 = vpop.eup %1376 }
 0x418   :  { %v1030_v38 = vmul.f32 %v1377_v28, %v1028_v26 }
 0x41a   :  { %v1032_v55 = vsel %vm1031_vm3, %v1028_v26, %v1030_v38 }
 0x41b   :  { %v1035_v33 = vsel %vm1033_vm4, %v1034_v29, %v1032_v55 }
 0x41c   :  { %v1037_v35 = vmul.f32 0.47942555, %v1035_v33 }
 0x41e   :  { %v1038_v36 = vsub.f32 %v1036_v1, %v1037_v35 }
 0x420   :  { %v1041_v53 = vsel %vm1039_vm6, %v1038_v36, %v1117_v62 }
 0x421   :  { %v1049_v59 = vsel %vm1048_vm5, %v1041_v53, %v1020_v21 }
 0x422   :  { %v1050_v37 = vmul.f32 30.0, %v1049_v59 }
 0x424   :  { %1051 = vst [vmem:[%s1695_s6] sm:$0xff] %v1050_v37 }

</bundles_post_ra>
